<compile_context>
chip_gen: v7x
topology: tpu7x:2x2x1
jax: 0.10.0
libtpu: 0.0.40
codegen_flags: <defaults>
</compile_context>

<pallas_src>
import functools

import jax
import jax.numpy as jnp
from jax import lax
from jax.experimental import pallas as pl
from jax.experimental.pallas import tpu as pltpu


def _round_up(v, m):
    return (v + m - 1) // m * m


def _shift_strip_kernel(shift_ref, x_ref, o_ref, *, k_per_step, c, h, w, pad):
    """One strip of K samples, all channels: out[b] = R_b @ img[b] @ C_b."""
    first = pl.program_id(0) * k_per_step        # first sample index of this strip

    # Index grids shared by every sample in the strip (TPU needs >= 2-D iotas).
    in_row = lax.broadcasted_iota(jnp.int32, (h, h), 1)    # axis1 = input row i'
    in_col = lax.broadcasted_iota(jnp.int32, (w, w), 0)    # axis0 = input col j'
    out_row = lax.broadcasted_iota(jnp.int32, (h, 1), 0)   # output row i
    out_col = lax.broadcasted_iota(jnp.int32, (1, w), 1)   # output col j

    def body(kk, carry):
        b = first + kk
        # PyTorch order: shift[..., 0] = x (columns), shift[..., 1] = y (rows).
        sx = shift_ref[2 * b]
        sy = shift_ref[2 * b + 1]

        # Exact integer source indices; replicate padding == clamp to [0, h-1].
        r_src = jnp.clip(out_row + (sy - pad), 0, h - 1)            # (h, 1)
        c_src = jnp.clip(out_col + (sx - pad), 0, w - 1)            # (1, w)
        r_mat = jnp.where(in_row == r_src, 1.0, 0.0).astype(jnp.float32)  # (h, h)
        c_mat = jnp.where(in_col == c_src, 1.0, 0.0).astype(jnp.float32)  # (w, w)

        img = x_ref[kk].astype(jnp.float32)                          # (c, h, w)
        # Columns: one flattened, well-filled matmul (M = c*h).
        tmp = jnp.dot(img.reshape(c * h, w), c_mat,
                      preferred_element_type=jnp.float32).reshape(c, h, w)
        # Rows: one batched dot_general over channels (c, h, h) @ (c, h, w).
        out = lax.dot_general(
            jnp.broadcast_to(r_mat, (c, h, h)), tmp,
            dimension_numbers=(((2,), (1,)), ((0,), (0,))),
            preferred_element_type=jnp.float32)
        # One-hot weights -> values are exact; the cast is lossless even for
        # integer (e.g. uint8) observation dtypes.
        o_ref[kk] = out.astype(o_ref.dtype)
        return carry

    if k_per_step == 1:
        body(0, 0)
    else:
        lax.fori_loop(0, k_per_step, body, 0)


def random_shifts_aug(x, shift, pad, *, samples_per_step=None,
                      vmem_block_budget_bytes=12 * 1024 * 1024):
    """x: (n, c, h, w) NCHW; shift: (n, 2) int32 in [0, 2*pad] (col, row)."""
    n, c, h, w = x.shape
    assert h == w, "RandomShiftsAug requires square images"

    # Padded VMEM footprint of one sample's block ((8,128) lane/sublane padding),
    # counted for input + output, double-buffered -> 4x.
    per_sample = c * _round_up(h, 8) * _round_up(w, 128) * x.dtype.itemsize
    if samples_per_step is None:
        samples_per_step = max(1, vmem_block_budget_bytes // (4 * per_sample))
    k = int(max(1, min(samples_per_step, n)))
    if n >= 2:
        k = max(1, min(k, n // 2))   # keep grid >= 2 steps so v7x megacore has work
    while n % k:                     # largest divisor of n that fits the budget
        k -= 1
    # TODO(synk): prime-ish n falls back to a small k; a masked remainder step
    # would avoid the extra per-grid-step overhead in that case.

    # Flat SMEM layout: [x0, y0, x1, y1, ...]  (avoids (n,128)-word 2-D padding).
    shift_flat = jnp.asarray(shift, jnp.int32).reshape(-1)

    kernel = functools.partial(
        _shift_strip_kernel, k_per_step=k, c=c, h=h, w=w, pad=pad)

    grid_spec = pltpu.PrefetchScalarGridSpec(
        num_scalar_prefetch=1,                        # `shift_flat` lands in SMEM
        grid=(n // k,),
        in_specs=[
            pl.BlockSpec((k, c, h, w), lambda b, s: (b, 0, 0, 0)),
        ],
        out_specs=pl.BlockSpec((k, c, h, w), lambda b, s: (b, 0, 0, 0)),
    )

    return pl.pallas_call(
        kernel,
        out_shape=jax.ShapeDtypeStruct((n, c, h, w), x.dtype),
        grid_spec=grid_spec,
        compiler_params=pltpu.CompilerParams(
            dimension_semantics=("parallel",),        # batch axis -> 2 TCs on v7x
            vmem_limit_bytes=48 * 1024 * 1024,        # headroom on v5e's 16 MiB default
        ),
    )(shift_flat, x)


def _reference(x, shift, pad):
    """Pure-JAX reference: replicate pad + integer crop (exact semantics)."""
    n, c, h, w = x.shape
    xp = jnp.pad(x, ((0, 0), (0, 0), (pad, pad), (pad, pad)), mode="edge")
    outs = []
    for b in range(n):
        sx = int(shift[b, 0])
        sy = int(shift[b, 1])
        outs.append(xp[b, :, sy:sy + h, sx:sx + w])
    return jnp.stack(outs, axis=0)


if __name__ == "__main__":
    key = jax.random.PRNGKey(0)
    kx, ks = jax.random.split(key)

    n, c, h, w = 2, 4, 16, 16
    pad = 4

    x = jax.random.normal(kx, (n, c, h, w), dtype=jnp.float32)
    # torch.randint(0, 2*pad+1) equivalent (module's randomness; RNG stream differs)
    shift = jax.random.randint(ks, (n, 2), 0, 2 * pad + 1, dtype=jnp.int32)

    out = random_shifts_aug(x, shift, pad)
    jax.block_until_ready(out)

    ref = _reference(x, shift, pad)
    assert out.shape == (n, c, h, w)
    max_err = float(jnp.max(jnp.abs(out - ref)))
    assert max_err < 1e-5, f"mismatch vs reference: {max_err}"

    print("KERNEL_OK")
</pallas_src>

<mosaic_0001>
module attributes {stable_mosaic.version = 11 : i64} {
  func.func @_shift_strip_kernel(%arg0: i32, %arg1: memref<4xi32, #tpu.memory_space<smem>>, %arg2: memref<1x4x16x16xf32, #tpu.memory_space<vmem>>, %arg3: memref<1x4x16x16xf32, #tpu.memory_space<vmem>>) attributes {dimension_semantics = [#tpu.dimension_semantics<parallel>], iteration_bounds = array<i64: 2>, scalar_prefetch = 1 : i64, scratch_operands = 0 : i64, tpu.core_type = #tpu.core_type<tc>, window_params = [{transform_indices = @transform_0, window_bounds = array<i64: 1, 4, 16, 16>}, {transform_indices = @transform_1, window_bounds = array<i64: 1, 4, 16, 16>}]} {
    %c1_i32 = arith.constant 1 : i32
    %0 = arith.muli %arg0, %c1_i32 : i32
    %1 = tpu.iota {dimensions = array<i32: 1>} : vector<16x16xi32>
    %2 = tpu.iota {dimensions = array<i32: 0>} : vector<16x16xi32>
    %3 = tpu.iota {dimensions = array<i32: 0>} : vector<16x1xi32>
    %4 = tpu.iota {dimensions = array<i32: 1>} : vector<1x16xi32>
    %c0_i32 = arith.constant 0 : i32
    %5 = arith.addi %0, %c0_i32 : i32
    %c2_i32 = arith.constant 2 : i32
    %6 = arith.muli %c2_i32, %5 : i32
    %7 = arith.index_cast %6 : i32 to index
    %8 = memref.load %arg1[%7] : memref<4xi32, #tpu.memory_space<smem>>
    %c2_i32_0 = arith.constant 2 : i32
    %9 = arith.muli %c2_i32_0, %5 : i32
    %c1_i32_1 = arith.constant 1 : i32
    %10 = arith.addi %9, %c1_i32_1 : i32
    %11 = arith.index_cast %10 : i32 to index
    %12 = memref.load %arg1[%11] : memref<4xi32, #tpu.memory_space<smem>>
    %c4_i32 = arith.constant 4 : i32
    %13 = arith.subi %12, %c4_i32 : i32
    %14 = vector.broadcast %13 : i32 to vector<16x1xi32>
    %15 = arith.addi %3, %14 : vector<16x1xi32>
    %c0_i32_2 = arith.constant 0 : i32
    %c15_i32 = arith.constant 15 : i32
    %16 = vector.broadcast %c0_i32_2 : i32 to vector<16x1xi32>
    %17 = arith.maxsi %16, %15 : vector<16x1xi32>
    %18 = vector.broadcast %c15_i32 : i32 to vector<16x1xi32>
    %19 = arith.minsi %18, %17 : vector<16x1xi32>
    %c4_i32_3 = arith.constant 4 : i32
    %20 = arith.subi %8, %c4_i32_3 : i32
    %21 = vector.broadcast %20 : i32 to vector<1x16xi32>
    %22 = arith.addi %4, %21 : vector<1x16xi32>
    %c0_i32_4 = arith.constant 0 : i32
    %c15_i32_5 = arith.constant 15 : i32
    %23 = vector.broadcast %c0_i32_4 : i32 to vector<1x16xi32>
    %24 = arith.maxsi %23, %22 : vector<1x16xi32>
    %25 = vector.broadcast %c15_i32_5 : i32 to vector<1x16xi32>
    %26 = arith.minsi %25, %24 : vector<1x16xi32>
    %27 = vector.broadcast %19 : vector<16x1xi32> to vector<16x16xi32>
    %28 = arith.cmpi eq, %1, %27 : vector<16x16xi32>
    %cst = arith.constant 1.000000e+00 : f32
    %cst_6 = arith.constant 0.000000e+00 : f32
    %29 = vector.broadcast %cst : f32 to vector<16x16xf32>
    %30 = vector.broadcast %cst_6 : f32 to vector<16x16xf32>
    %31 = arith.select %28, %29, %30 : vector<16x16xi1>, vector<16x16xf32>
    %32 = vector.broadcast %26 : vector<1x16xi32> to vector<16x16xi32>
    %33 = arith.cmpi eq, %2, %32 : vector<16x16xi32>
    %cst_7 = arith.constant 1.000000e+00 : f32
    %cst_8 = arith.constant 0.000000e+00 : f32
    %34 = vector.broadcast %cst_7 : f32 to vector<16x16xf32>
    %35 = vector.broadcast %cst_8 : f32 to vector<16x16xf32>
    %36 = arith.select %33, %34, %35 : vector<16x16xi1>, vector<16x16xf32>
    %c0 = arith.constant 0 : index
    %c0_9 = arith.constant 0 : index
    %c0_10 = arith.constant 0 : index
    %c0_11 = arith.constant 0 : index
    %37 = vector.load %arg2[%c0, %c0_9, %c0_10, %c0_11] : memref<1x4x16x16xf32, #tpu.memory_space<vmem>>, vector<1x4x16x16xf32>
    %38 = vector.shape_cast %37 : vector<1x4x16x16xf32> to vector<4x16x16xf32>
    %39 = vector.shape_cast %38 : vector<4x16x16xf32> to vector<64x16xf32>
    %cst_12 = arith.constant dense<0.000000e+00> : vector<64x16xf32>
    %40 = tpu.matmul %39, %36, %cst_12 {dimension_numbers = #tpu.dot_dimension_numbers<[1], [0], [0], [1], [0, 0, 1, 1], [], []>} : vector<64x16xf32>, vector<16x16xf32>, vector<64x16xf32> -> vector<64x16xf32>
    %41 = vector.shape_cast %40 : vector<64x16xf32> to vector<4x16x16xf32>
    %42 = vector.shape_cast %31 : vector<16x16xf32> to vector<1x16x16xf32>
    %43 = vector.broadcast %42 : vector<1x16x16xf32> to vector<4x16x16xf32>
    %cst_13 = arith.constant dense<0.000000e+00> : vector<4x16x16xf32>
    %44 = tpu.matmul %43, %41, %cst_13 {dimension_numbers = #tpu.dot_dimension_numbers<[2], [1], [1], [2], [0, 0, 0, 1, 1, 2], [0], [0]>} : vector<4x16x16xf32>, vector<4x16x16xf32>, vector<4x16x16xf32> -> vector<4x16x16xf32>
    %c0_14 = arith.constant 0 : index
    %c0_15 = arith.constant 0 : index
    %c0_16 = arith.constant 0 : index
    %c0_17 = arith.constant 0 : index
    %45 = vector.load %arg3[%c0_14, %c0_15, %c0_16, %c0_17] : memref<1x4x16x16xf32, #tpu.memory_space<vmem>>, vector<1x4x16x16xf32>
    %46 = vector.shape_cast %45 : vector<1x4x16x16xf32> to vector<4x16x16xf32>
    %47 = vector.shape_cast %44 : vector<4x16x16xf32> to vector<1x4x16x16xf32>
    tpu.vector_store %arg3[%c0_14, %c0_15, %c0_16, %c0_17], %47 {strides = array<i32>} : memref<1x4x16x16xf32, #tpu.memory_space<vmem>>, vector<1x4x16x16xf32>,
    return
  }
  func.func @transform_0(%arg0: i32, %arg1: memref<4xi32, #tpu.memory_space<smem>>) -> (i32, i32, i32, i32) {
    %c0_i32 = arith.constant 0 : i32
    %c0_i32_0 = arith.constant 0 : i32
    %c0_i32_1 = arith.constant 0 : i32
    %c0_i32_2 = arith.constant 0 : i32
    return %arg0, %c0_i32, %c0_i32_0, %c0_i32_1 : i32, i32, i32, i32
  }
  func.func @transform_1(%arg0: i32, %arg1: memref<4xi32, #tpu.memory_space<smem>>) -> (i32, i32, i32, i32) {
    %c0_i32 = arith.constant 0 : i32
    %c0_i32_0 = arith.constant 0 : i32
    %c0_i32_1 = arith.constant 0 : i32
    %c0_i32_2 = arith.constant 0 : i32
    return %arg0, %c0_i32, %c0_i32_0, %c0_i32_1 : i32, i32, i32, i32
  }
}

</mosaic_0001>

<bundles_post_ra>
// kernel: tpu_custom_call.1
= control target key start
LH: loop header
LB: loop body
LE: loop exit
PB: predicated region body
PF: predicated region fallthrough
CT: control target
= control target key end

     0   :  { %s1242_s0 = inlined_call_operand.hbm [shape: s32[4], index: 0, kind: input, shape index: {}]   ;;  %s1243_s1 = inlined_call_operand.hbm [shape: f32[2,4,16,16], index: 1, kind: input, shape index: {}]   ;;  %s1244_s2 = inlined_call_operand.hbm [shape: f32[2,4,16,16], index: 2, kind: output, shape index: {}]  }
   0x1   :  { %s895_s11 = scalar_lea.hbm %s1242_s0, 16 }
   0x2   :  { %p896_p0 = scmp.ne.s32.totalorder %s1242_s0, %s895_s11  ;;  %p899_p1 = scmp.lt.u32.totalorder %s895_s11, %s1242_s0 }
   0x4   :  { %p901_p2 = pnand %p899_p1, %p896_p0 }
   0x6   :  { %904 = shalt.err (!%p901_p2)  }
   0x7   :  { %s1005_s16 = smov [#allocation3]  }
   0x8   :  { %8 = dma.hbm_to_smem %s1242_s0, 16, %s1005_s16, [#allocation2] }
   0x9   :  { %979 = dma.done.wait [#allocation2], 16 }
   0xa   :  { %980 = vsyncadd [#allocation2], 4294967280 }
   0xb   :  { %10 = sfence }
   0xc   :  { %11 = vsyncpa [#allocation5], 0 }
   0xd   :  { %13 = vsyncpa [#allocation5 + $0x1], 0 }
   0xe   :  { %14 = vsyncpa [#allocation6], 0 }
   0xf   :  { %16 = vsyncpa [#allocation6 + $0x1], 0  ;;  %s1041_s19 = smov 0   ;;  %s1043_s20 = smov 0  }
  0x10   :  { %s1045_s21 = smov 0   ;;  %s1047_s22 = smov 0  }
  0x11 LB: > { %s1062_s0 = sadd.s32 4294967295, %s1003_s22   ;;  %s715_s23 = sadd.s32 4294967294, %s1003_s22   ;;  %s1003_s22 = sphi %s1047_s22, %s1257_s22   ;;  %s999_s21 = sphi %s1045_s21, %s1256_s21   ;;  %s995_s20 = sphi %s1043_s20, %s1255_s20   ;;  %s991_s19 = sphi %s1041_s19, %s1254_s19  }
  0x12   : > { %s1066_s24 = sadd.s32 1, %s1003_s22   ;;  %s29_s25 = sadd.s32 1, %s999_s21 }
  0x13   : > { %s26_s26 = ssub.s32 %s1003_s22, %s1066_s24  ;;  %p36_p3 = scmp.ne.s32.totalorder %s999_s21, %s995_s20 }
  0x14   : > { %p27_p4 = scmp.eq.s32.totalorder %s26_s26, 0  ;;  %p37_p5 = scmp.eq.s32.totalorder %s1003_s22, 0 }
  0x15   : > { %p42_p6 = scmp.ne.s32.totalorder %s995_s20, %s991_s19  ;;  %p43_p7 = scmp.eq.s32.totalorder %s1062_s0, 0 }
  0x16   : > { %s1078_s27 = scalar_select %p27_p4, %s999_s21, %s29_s25  }
  0x17   : > { %p1080_p8 = por %p37_p5, %p36_p3  ;;  %p1084_p9 = por %p43_p7, %p42_p6 }
  0x18   : > { %p66_p10 = scmp.eq.s32.totalorder %s1062_s0, 1  ;;  %p72_p11 = scmp.eq.s32.totalorder %s715_s23, 1 }
  0x19   : > { %p854_p13 = scmp.lt.s32.totalorder %s1003_s22, 2  ;;  %s92_s4 = sand.u32 1, %s999_s21  }
  0x1a   : > { %p1091_p0 = por %p66_p10, %p36_p3  ;;  %p1095_p1 = por %p72_p11, %p42_p6 }
  0x1b   : > { %s750_s5 = sshll.u32 %s1003_s22, 10  ;;  %s718_s6 = sshll.u32 %s92_s4, 6 }
  0x1c   : > { %s1248_s30 = scalar_select %p1091_p0, 1, 0 }
  0x1d   : > { %s1249_s3 = scalar_select %p1095_p1, 1, 0 }
  0x1e   : > { %s1104_s9 = scalar_lea.hbm %s1243_s1, %s750_s5  ;;  %s96_s10 = scalar_lea.vmem [#allocation4], %s718_s6 }
  0x1f   : > { %s103_s11 = sshll.u32 %s96_s10, 4  ;;  %p1108_p2 = pnand %p854_p13, %p1080_p8  ;;  %s1112_s11 = int_to_ptr.vmem [resolvable:$true] %s103_s11 }
  0x20   : > { %s1114_s13 = scalar_lea.sflag [#allocation5], %s92_s4  ;;  %s905_s14 = scalar_lea.hbm %s1104_s9, 1024 }
  0x21   : > { %p906_p3 = scmp.ne.s32.totalorder %s1104_s9, %s905_s14  ;;  %p907_p4 = pneg %p1108_p2 }
  0x22   : > { %s910_s17 = scalar_lea.hbm %s1243_s1, 2048  ;;  %p911_p7 = scmp.lt.u32.totalorder %s1104_s9, %s1243_s1 }
  0x23   : > { %p908_p5 = pnand %p907_p4, %p906_p3  ;;  %p912_p8 = scmp.lt.u32.totalorder %s910_s17, %s905_s14 }
  0x24   : > { %p914_p11 = scmp.lt.u32.totalorder %s905_s14, %s1104_s9 }
  0x25   : > { %p909_p6 = pneg %p908_p5  ;;  %p913_p10 = por %p912_p8, %p911_p7 }
  0x27   : > { %p915_p13 = por %p914_p11, %p913_p10 }
  0x29   : > { %p916_p12 = pnand %p915_p13, %p909_p6 }
  0x2b   : > { %919 = shalt.err (!%p916_p12)
}
  0x2c   : > { %s920_s25 = scalar_lea.vmem %s1112_s11, 1024  ;;  %s1006_s26 = smov [#allocation4]  }
  0x2d   : > { %p921_p3 = scmp.ne.s32.totalorder %s1112_s11, %s920_s25  ;;  %s925_s28 = sshll.u32 %s1006_s26, 4  ;;  %s926_s28 = int_to_ptr.vmem [resolvable:$false] %s925_s28 }
  0x2e   : > { %s927_s4 = scalar_lea.vmem %s926_s28, 2048  ;;  %p928_p0 = scmp.lt.s32.totalorder %s1112_s11, %s926_s28 }
  0x2f   : > { %p923_p5 = pnand %p921_p3, %p907_p4  ;;  %p929_p7 = scmp.lt.s32.totalorder %s927_s4, %s920_s25 }
  0x31   : > { %p924_p1 = pneg %p923_p5  ;;  %p930_p8 = por %p929_p7, %p928_p0 }
  0x33   : > { %p931_p10 = pnand %p930_p8, %p924_p1 }
  0x35   : > { %934 = shalt.err (!%p931_p10)
}
  0x36   : > { %s1007_s5 = smov 128   ;;  %s1008_s6 = smov 8  }
  0x37   : > { %849 = dma.hbm_to_vmem [thread:$0]  (!%p1108_p2), %s1104_s9, 1024, %s1112_s11, %s1114_s13, %s1007_s5, %s1007_s5, %s1008_s6  }
  0x38   : > { %p721_p12 = scmp.ge.s32.totalorder %s1003_s22, 1  ;;  %p111_p4 = scmp.lt.s32.totalorder %s1003_s22, 3 }
  0x3a   : > { %p112_p6 = pnand %p721_p12, %p111_p4 }
  0x3b   : > { %s1145_s7 = sand.u32 (!%p112_p6), 1, %s995_s20  }
  0x3c   : > { %115 = sbr.rel (%p112_p6) target bundleno = 548 (0x224), region = 24  ;;  %s722_s8 = sshll.u32 (!%p112_p6), %s1145_s7, 6 }
  0x3d   : > { %s118_s10 = scalar_lea.sflag (!%p112_p6), [#allocation5], %s1145_s7  ;;  %s1151_s14 = scalar_lea.vmem (!%p112_p6), [#allocation4], %s722_s8 }
  0x43   : > { %982 = dma.done.wait (%p1084_p9), %s118_s10, 1024  }
  0x44   : > { %984 = vsyncadd (%p1084_p9), %s118_s10, 4294966272  ;;  %s724_s9 = sshll.u32 %s1062_s0, 1  ;;  %v140_v0 = vlaneseq  ;;  %vm184_vm0 = vcmask 130048   ;;  %v176_v3 = vld [vmem:[%s1151_s14] sm:$0xff]  ;;  %v1009_v12 = vmov 1.0|1.0  }
  0x45   : > { %s146_s11 = sld [smem:[#allocation3 + %s724_s9]]  ;;  %s147_s12 = sadd.s32 1, %s724_s9  ;;  %782 = vmatprep.mubr.msk.f32.mxu0 %vm184_vm0, %v176_v3  ;;  %v177_v13 = vld [vmem:[%s1151_s14 + $0x8] sm:$0xff]  ;;  %v178_v14 = vld [vmem:[%s1151_s14 + $0x10] sm:$0xff]  ;;  %v179_v15 = vld [vmem:[%s1151_s14 + $0x18] sm:$0xff]  ;;  %v1010_v24 = vmov 0.0  }
  0x46   : > { %s148_s13 = sld [smem:[#allocation3 + %s147_s12]]  ;;  %v143_v1 = vshrl.u32 %v140_v0, 7  ;;  %v141_v2 = vand.u32 127, %v140_v0  ;;  %v180_v16 = vld [vmem:[%s1151_s14 + $0x20] sm:$0xff]  ;;  %v181_v17 = vld [vmem:[%s1151_s14 + $0x28] sm:$0xff]  ;;  %v182_v18 = vld [vmem:[%s1151_s14 + $0x30] sm:$0xff] }
  0x47   : > { %v183_v19 = vld [vmem:[%s1151_s14 + $0x38] sm:$0xff]  ;;  %s139_s29 = scalar_lea.vmem [#allocation7], %s722_s8  ;;  %s751_s18 = sshll.u32 %s1062_s0, 10 }
  0x48   : > { %v144_v4 = vadd.s32 8, %v143_v1  ;;  %s642_s17 = sshll.u32 %s139_s29, 4  ;;  %s1196_s26 = scalar_lea.hbm %s1244_s2, %s751_s18  ;;  %s1190_s17 = int_to_ptr.vmem [resolvable:$true] %s642_s17 }
  0x49   : > { %s629_s0 = scalar_lea.sflag [#allocation6], %s1145_s7  ;;  %s935_s28 = scalar_lea.vmem %s1190_s17, 1024 }
  0x4a   : > { %p936_p9 = scmp.ne.s32.totalorder %s1190_s17, %s935_s28  ;;  %p1251_p0 = scmp.ne.s32.totalorder %s1248_s30, 0 }
  0x4b   : > { %s726_s15 = sadd.s32 4294967292, %s146_s11  ;;  %s1011_s4 = smov [#allocation7]  }
  0x4c   : > { %s725_s16 = sadd.s32 4294967292, %s148_s13  ;;  %v162_v5 = vstv %s726_s15  ;;  %p937_p1 = pnand %p936_p9, %p1251_p0 }
  0x4d   : > { %v150_v6 = vstv %s725_s16  ;;  %v163_v7 = vadd.s32 %v162_v5, %v141_v2  ;;  %s939_s5 = sshll.u32 %s1011_s4, 4  ;;  %s940_s5 = int_to_ptr.vmem [resolvable:$false] %s939_s5 }
  0x4e   : > { %v151_v8 = vadd.s32 %v150_v6, %v143_v1  ;;  %v152_v9 = vadd.s32 %v150_v6, %v144_v4  ;;  %p938_p2 = pneg %p937_p1  ;;  %s941_s6 = scalar_lea.vmem %s940_s5, 2048 }
  0x4f   : > { %vm164_vm1 = vcmp.gt.s32.totalorder %v163_v7, 0  ;;  %p942_p11 = scmp.lt.s32.totalorder %s1190_s17, %s940_s5  ;;  %p943_p13 = scmp.lt.s32.totalorder %s941_s6, %s935_s28 }
  0x50   : > { %v165_v10 = vsel %vm164_vm1, %v163_v7, 0  ;;  %vm153_vm6 = vcmp.gt.s32.totalorder %v151_v8, 0  ;;  %vm155_vm7 = vcmp.gt.s32.totalorder %v152_v9, 0 }
  0x51   : > { %vm166_vm2 = vcmp.lt.s32.totalorder %v165_v10, 15  ;;  %v154_v20 = vsel %vm153_vm6, %v151_v8, 0  ;;  %v156_v21 = vsel %vm155_vm7, %v152_v9, 0  ;;  %p944_p3 = por %p943_p13, %p942_p11 }
  0x52   : > { %v167_v11 = vsel %vm166_vm2, %v165_v10, 15  ;;  %vm157_vm8 = vcmp.lt.s32.totalorder %v154_v20, 15  ;;  %vm159_vm9 = vcmp.lt.s32.totalorder %v156_v21, 15 }
  0x53   : > { %vm172_vm3 = vcmp.eq.s32.totalorder %v143_v1, %v167_v11  ;;  %vm173_vm4 = vcmp.eq.s32.totalorder %v144_v4, %v167_v11  ;;  %v158_v22 = vsel %vm157_vm8, %v154_v20, 15  ;;  %v160_v23 = vsel %vm159_vm9, %v156_v21, 15  ;;  %p945_p5 = pnand %p944_p3, %p938_p2 }
  0x54   : > { %vm822_vm5 = vmpackc.low %vm173_vm4, %vm172_vm3  ;;  %vm168_vm10 = vcmp.eq.s32.totalorder %v141_v2, %v158_v22  ;;  %vm169_vm11 = vcmp.eq.s32.totalorder %v141_v2, %v160_v23 }
  0x55   : > { %823 = vmatprep.subr.msk.bf16.mxu0 %vm822_vm5, %v1009_v12  ;;  %v170_v25 = vsel %vm168_vm10, 1.0, %v1010_v24  ;;  %v171_v26 = vsel %vm169_vm11, 1.0, %v1010_v24 }
  0x56   : > { %825 = vmatpush3.bf16.msk.msra.mxu0 %vm822_vm5, %v1009_v12  ;;  %798 = vmatprep.mubr.msk.f32.mxu1 %vm184_vm0, %v170_v25 }
  0x59   : > { %783 = vmatmul.mubr.msk.f32.vlgmr.msra.gmra.mrb[0].mxu0 %vm184_vm0, %v177_v13 }
  0x5a   : > { %785 = vmatprep.mubr.msk.f32.mxu0 %vm184_vm0, %v178_v14 }
  0x5d   : > { %786 = vmatmul.mubr.msk.f32.gmra.mrb[2].mxu0 %vm184_vm0, %v179_v15 }
  0x5e   : > { %788 = vmatprep.mubr.msk.f32.mxu0 %vm184_vm0, %v180_v16 }
  0x61   : > { %789 = vmatmul.mubr.msk.f32.gmra.mrb[4].mxu0 %vm184_vm0, %v181_v17 }
  0x62   : > { %791 = vmatprep.mubr.msk.f32.mxu0 %vm184_vm0, %v182_v18 }
  0x65   : > { %792 = vmatmul.mubr.msk.f32.gmra.mrb[6].mxu0 %vm184_vm0, %v183_v19 }
 0x12c   : > { %v784_v27 = vpop.f32.mrb[0].mxu0 }
 0x12d   : > { %v275_v28 = vpop.f32.mrb[1].mxu0 }
 0x12e   : > { %v826_v29 = vpack.c.bf16 %v784_v27, %v275_v28 }
 0x130   : > { %v787_v30 = vpop.f32.mrb[2].mxu0  ;;  %827 = vmatprep.subr.bf16.mxu1 %v826_v29 }
 0x131   : > { %v285_v31 = vpop.f32.mrb[3].mxu0  ;;  %829 = vmatpush3.bf16.msra.mxu1 %v826_v29 }
 0x132   : > { %v830_v32 = vpack.c.bf16 %v787_v30, %v285_v31 }
 0x134   : > { %v790_v33 = vpop.f32.mrb[4].mxu0  ;;  %799 = vmatmul.mubr.msk.f32.vlgmr.msra.gmra.mrb[0].mxu1 %vm184_vm0, %v171_v26  ;;  %831 = vmatprep.subr.bf16.mxu1 %v830_v32 }
 0x135   : > { %v295_v34 = vpop.f32.mrb[5].mxu0  ;;  %833 = vmatpush3.bf16.msra.mxu1 %v830_v32  ;;  %805 = vmatprep.mubr.msk.f32.mxu1 %vm184_vm0, %v170_v25 }
 0x136   : > { %v834_v35 = vpack.c.bf16 %v790_v33, %v295_v34 }
 0x138   : > { %v793_v36 = vpop.f32.mrb[6].mxu0  ;;  %806 = vmatmul.mubr.msk.f32.vlgmr.msra.gmra.mrb[2].mxu1 %vm184_vm0, %v171_v26  ;;  %835 = vmatprep.subr.bf16.mxu1 %v834_v35 }
 0x139   : > { %v305_v37 = vpop.f32.mrb[7].mxu0  ;;  %837 = vmatpush3.bf16.msra.mxu1 %v834_v35  ;;  %812 = vmatprep.mubr.msk.f32.mxu1 %vm184_vm0, %v170_v25 }
 0x13a   : > { %v838_v38 = vpack.c.bf16 %v793_v36, %v305_v37 }
 0x13c   : > { %813 = vmatmul.mubr.msk.f32.vlgmr.msra.gmra.mrb[4].mxu1 %vm184_vm0, %v171_v26  ;;  %839 = vmatprep.subr.bf16.mxu1 %v838_v38 }
 0x13d   : > { %841 = vmatpush3.bf16.msra.mxu1 %v838_v38  ;;  %819 = vmatprep.mubr.msk.f32.mxu1 %vm184_vm0, %v170_v25 }
 0x140   : > { %820 = vmatmul.mubr.msk.f32.vlgmr.msra.gmra.mrb[6].mxu1 %vm184_vm0, %v171_v26 }
 0x207   : > { %v800_v39 = vpop.f32.mrb[0].mxu1 }
 0x208   : > { %621 = vst.msk [vmem:[%s139_s29 + $0x8] sm:$0xff] %vm184_vm0, %v800_v39  ;;  %v386_v40 = vpop.f32.mrb[1].mxu1 }
 0x209   : > { %620 = vst.msk [vmem:[%s139_s29] sm:$0xff] %vm184_vm0, %v386_v40 }
 0x20b   : > { %v807_v41 = vpop.f32.mrb[2].mxu1 }
 0x20c   : > { %623 = vst.msk [vmem:[%s139_s29 + $0x18] sm:$0xff] %vm184_vm0, %v807_v41  ;;  %v461_v42 = vpop.f32.mrb[3].mxu1 }
 0x20d   : > { %622 = vst.msk [vmem:[%s139_s29 + $0x10] sm:$0xff] %vm184_vm0, %v461_v42 }
 0x20f   : > { %v814_v43 = vpop.f32.mrb[4].mxu1 }
 0x210   : > { %625 = vst.msk [vmem:[%s139_s29 + $0x28] sm:$0xff] %vm184_vm0, %v814_v43  ;;  %v536_v44 = vpop.f32.mrb[5].mxu1 }
 0x211   : > { %624 = vst.msk [vmem:[%s139_s29 + $0x20] sm:$0xff] %vm184_vm0, %v536_v44 }
 0x213   : > { %v821_v45 = vpop.f32.mrb[6].mxu1 }
 0x214   : > { %627 = vst.msk [vmem:[%s139_s29 + $0x38] sm:$0xff] %vm184_vm0, %v821_v45  ;;  %v611_v46 = vpop.f32.mrb[7].mxu1 }
 0x215   : > { %626 = vst.msk [vmem:[%s139_s29 + $0x30] sm:$0xff] %vm184_vm0, %v611_v46 }
 0x216   : > { %948 = shalt.err (!%p945_p5)
}
 0x217   : > { %s949_s8 = scalar_lea.hbm %s1196_s26, 1024  ;;  %s953_s9 = scalar_lea.hbm %s1244_s2, 2048 }
 0x218   : > { %p950_p7 = scmp.ne.s32.totalorder %s1196_s26, %s949_s8  ;;  %p954_p12 = scmp.lt.u32.totalorder %s1196_s26, %s1244_s2 }
 0x219   : > { %p955_p4 = scmp.lt.u32.totalorder %s953_s9, %s949_s8  ;;  %p957_p9 = scmp.lt.u32.totalorder %s949_s8, %s1196_s26 }
 0x21a   : > { %p951_p8 = pnand %p950_p7, %p1251_p0 }
 0x21b   : > { %p956_p6 = por %p955_p4, %p954_p12 }
 0x21c   : > { %p952_p10 = pneg %p951_p8 }
 0x21d   : > { %p958_p1 = por %p957_p9, %p956_p6 }
 0x21f   : > { %p959_p2 = pnand %p958_p1, %p952_p10 }
 0x221   : > { %962 = shalt.err (!%p959_p2)
}
 0x222   : > { %s1012_s13 = smov 128   ;;  %s1013_s15 = smov 8  }
 0x223   : > { %844 = dma.vmem_to_hbm [thread:$0]  (%p1251_p0), %s1190_s17, 1024, %s1196_s26, %s629_s0, %s1012_s13, %s1012_s13, %s1013_s15  }
 0x224 PF: > { %s657_s16 = sand.u32 1, %s991_s19   ;;  %p1252_p11 = scmp.ne.s32.totalorder %s1249_s3, 0 }
 0x225   : > { %p1253_p13 = scmp.ge.s32.totalorder %s1003_s22, 2  ;;  %s658_s29 = scalar_lea.sflag [#allocation6], %s657_s16 }
 0x227   : > { %p851_p3 = pnand %p1253_p13, %p1252_p11 }
 0x229   : > { %986 = dma.done.wait (!%p851_p3), %s658_s29, 1024  }
 0x22a   : > { %988 = vsyncadd (!%p851_p3), %s658_s29, 4294966272  ;;  %p19_p5 = scmp.ge.s32.totalorder %s1066_s24, 4   ;;  %s1254_s19 = smov %s995_s20 }
 0x22b   : > { %s1255_s20 = smov %s999_s21  ;;  %s1256_s21 = smov %s1078_s27 }
 0x22c   : > { %s1257_s22 = smov %s1066_s24  ;;  %21 = sbr.rel (!%p19_p5) target bundleno = 17 (0x11), region = 69 }
 0x233   :  { %663 = vsyncpa [#allocation5], 1 }
 0x234   :  { %665 = vsyncpa [#allocation5 + $0x1], 1 }
 0x235   :  { %666 = vsyncpa [#allocation6], 1 }
 0x236   :  { %668 = vsyncpa [#allocation6 + $0x1], 1 }

</bundles_post_ra>
